<compile_context>
chip_gen: v6e
topology: v6e:2x2x1
jax: 0.10.0
libtpu: 0.0.40
codegen_flags: <defaults>
</compile_context>

<pallas_src>
import math

import jax
import jax.numpy as jnp
from jax import lax
from jax.experimental import pallas as pl
from jax.experimental.pallas import tpu as pltpu


# ----------------------------------------------------------------------------
# Kernels
# ----------------------------------------------------------------------------
def _td_dense_kernel(d_ref, w_ref, b_ref, out_ref):
    # z = d @ W^T on the MXU: W stays (O, I), contract dim 1 with dim 1
    # (trans_b form), f32 accumulation.  Bias + relu + exp on VPU/EUP.
    z = lax.dot_general(
        d_ref[...], w_ref[...],
        dimension_numbers=(((1,), (1,)), ((), ())),
        preferred_element_type=jnp.float32,
    )
    z = z + b_ref[...]                                   # (TB, O) + (1, O)
    out_ref[...] = jnp.exp(-jnp.maximum(z, 0.0)).astype(out_ref.dtype)


def _td_diag_kernel(d_ref, w_ref, b_ref, out_ref):
    # diag=True: W * I is diagonal, so the linear layer is a per-column scale.
    # Pure elementwise (VPU/EUP) — no MXU pass, no O(I^2) weight traffic.
    z = d_ref[...].astype(jnp.float32) * w_ref[...] + b_ref[...]
    out_ref[...] = jnp.exp(-jnp.maximum(z, 0.0)).astype(out_ref.dtype)


# ----------------------------------------------------------------------------
# Tile selection helpers
# ----------------------------------------------------------------------------
def _vmem_capacity_bytes():
    try:
        info = pltpu.get_tpu_info()
        cap = getattr(info, "vmem_capacity_bytes", None)
        if cap:
            return int(cap)
    except Exception:
        pass
    return 64 * 1024 * 1024          # conservative fallback (v7x per-TC physical)


def _round_up(x, m):
    return ((x + m - 1) // m) * m


def _sublane_multiple(itemsize):
    # Sub-32-bit dtypes pack rows along sublanes: keep the row tile aligned.
    return {4: 8, 2: 16, 1: 32}.get(int(itemsize), 8)


def _pick_row_tile(rows, bytes_per_row, mult, budget_bytes):
    """Largest row tile that (a) fits `budget_bytes` when double-buffered,
    (b) is a multiple of `mult` (or equals `rows`), and (c) leaves the
    "parallel" grid axis with >= 2 steps when there is enough work so v7x's
    second TensorCore gets a share."""
    if rows <= mult:
        return rows                                     # single full block
    tb = (budget_bytes // (2 * bytes_per_row)) // mult * mult
    tb = max(tb, mult)
    tb = min(tb, _round_up(pl.cdiv(rows, 2), mult))     # >= 2 grid steps
    return int(tb)


# ----------------------------------------------------------------------------
# Wrapper
# ----------------------------------------------------------------------------
def temporal_decay(d, W, b, *, diag=False, vmem_budget_bytes=None):
    """Pallas implementation of TemporalDecay.forward.

    d : (..., input_size)      leading dims (e.g. (T, B)) are flattened into a
                               single row axis -> one pallas_call for a whole
                               scan's worth of deltas.
    W : (output_size, input_size)   (PyTorch nn.Linear convention)
    b : (output_size,)
    diag : use the diagonal-masked weight (requires input_size == output_size).
    returns gamma with shape (..., output_size) in d's dtype.
    """
    *lead, input_size = d.shape
    output_size, w_in = W.shape
    assert w_in == input_size, "W must be (output_size, input_size)"
    out_dtype = d.dtype
    n_rows = int(math.prod(lead)) if lead else 1
    d2 = d.reshape(n_rows, input_size)

    capacity = _vmem_capacity_bytes()
    if vmem_budget_bytes is None:
        vmem_budget_bytes = capacity // 8               # double-buffered tile budget
    vmem_limit = int(min(capacity // 2, 96 * 1024 * 1024))

    in_item = jnp.dtype(d.dtype).itemsize
    out_item = jnp.dtype(out_dtype).itemsize
    mult = _sublane_multiple(in_item)
    compiler_params = pltpu.CompilerParams(
        dimension_semantics=("parallel",),              # megacore split on v7x
        vmem_limit_bytes=vmem_limit,
    )
    b_f32 = b.astype(jnp.float32)

    if diag:
        assert input_size == output_size, "diag=True requires input_size == output_size"
        # Only the diagonal of W matters: d @ (W*I)^T == d * diag(W).
        w_diag = jnp.diagonal(W).astype(jnp.float32)

        packable = (
            input_size < 128
            and 128 % input_size == 0
            and (n_rows * input_size) % 128 == 0
            and n_rows * input_size >= 128
        )
        if packable:
            # Lane-dense packing: (N, I) -> (N*I/128, 128); weight/bias tiled.
            rep = 128 // input_size
            lanes = 128
            rows = (n_rows * input_size) // 128
            d_in = d2.reshape(rows, lanes)              # contiguous -> free reshape
            w_row = jnp.tile(w_diag, rep).reshape(1, lanes)
            b_row = jnp.tile(b_f32, rep).reshape(1, lanes)
        else:
            lanes = input_size
            rows = n_rows
            d_in = d2
            w_row = w_diag.reshape(1, lanes)
            b_row = b_f32.reshape(1, lanes)

        bytes_per_row = lanes * (in_item + out_item)
        tb = _pick_row_tile(rows, bytes_per_row, mult, vmem_budget_bytes)
        grid = (pl.cdiv(rows, tb),)
        cost = pl.CostEstimate(
            flops=2 * n_rows * output_size,
            transcendentals=n_rows * output_size,
            bytes_accessed=(in_item * n_rows * input_size
                            + out_item * n_rows * output_size
                            + 4 * 2 * lanes),
        )
        gamma = pl.pallas_call(
            _td_diag_kernel,
            out_shape=jax.ShapeDtypeStruct((rows, lanes), out_dtype),
            grid=grid,
            in_specs=[
                pl.BlockSpec((tb, lanes), lambda i: (i, 0)),
                pl.BlockSpec((1, lanes), lambda i: (0, 0)),
                pl.BlockSpec((1, lanes), lambda i: (0, 0)),
            ],
            out_specs=pl.BlockSpec((tb, lanes), lambda i: (i, 0)),
            compiler_params=compiler_params,
            cost_estimate=cost,
        )(d_in, w_row, b_row)
        return gamma.reshape(*lead, output_size)

    # ---- dense path: d @ W^T on the MXU, weight/bias VMEM-resident ---------
    w_arr = W if W.dtype == d.dtype else W.astype(d.dtype)   # tiny one-time cast
    b_row = b_f32.reshape(1, output_size)
    bytes_per_row = in_item * input_size + out_item * output_size
    tb = _pick_row_tile(n_rows, bytes_per_row, mult, vmem_budget_bytes)
    grid = (pl.cdiv(n_rows, tb),)
    w_item = jnp.dtype(w_arr.dtype).itemsize
    cost = pl.CostEstimate(
        flops=2 * n_rows * input_size * output_size,
        transcendentals=n_rows * output_size,
        bytes_accessed=(in_item * n_rows * input_size
                        + w_item * input_size * output_size
                        + 4 * output_size
                        + out_item * n_rows * output_size),
    )
    gamma = pl.pallas_call(
        _td_dense_kernel,
        out_shape=jax.ShapeDtypeStruct((n_rows, output_size), out_dtype),
        grid=grid,
        in_specs=[
            pl.BlockSpec((tb, input_size), lambda i: (i, 0)),
            pl.BlockSpec((output_size, input_size), lambda i: (0, 0)),
            pl.BlockSpec((1, output_size), lambda i: (0, 0)),
        ],
        out_specs=pl.BlockSpec((tb, output_size), lambda i: (i, 0)),
        compiler_params=compiler_params,
        cost_estimate=cost,
    )(d2, w_arr, b_row)
    return gamma.reshape(*lead, output_size)


# ----------------------------------------------------------------------------
# Parameter init matching reset_parameters: U(-stdv, stdv), stdv = 1/sqrt(O).
# ----------------------------------------------------------------------------
def _init_params(key, input_size, output_size):
    stdv = 1.0 / math.sqrt(output_size)
    kw, kb = jax.random.split(key)
    W = jax.random.uniform(kw, (output_size, input_size), jnp.float32,
                           minval=-stdv, maxval=stdv)
    b = jax.random.uniform(kb, (output_size,), jnp.float32,
                           minval=-stdv, maxval=stdv)
    return W, b


if __name__ == "__main__":
    key = jax.random.PRNGKey(0)
    k_d, k_p = jax.random.split(key)

    # Small shapes consistent with a BRITS RITS cell, with the timestep axis
    # hoisted out of the scan: (T, B, I) handled by ONE pallas_call.
    T, B, I, H = 4, 8, 32, 32          # seq=4, batch=8, input=hidden=32
    d = jax.random.uniform(k_d, (T, B, I), jnp.float32, minval=0.0, maxval=5.0)
    W, b = _init_params(k_p, I, H)

    # diag=False path (MXU kernel, trans_b contraction, batch-tiled grid).
    gamma = jax.block_until_ready(temporal_decay(d, W, b, diag=False))
    ref = jnp.exp(-jnp.maximum(jnp.einsum("tbi,oi->tbo", d, W) + b, 0.0))
    assert gamma.shape == (T, B, H)
    assert jnp.allclose(gamma, ref, atol=1e-5, rtol=1e-5)

    # diag=True path (lane-dense packed elementwise kernel: 128 % 32 == 0).
    gamma_d = jax.block_until_ready(temporal_decay(d, W, b, diag=True))
    ref_d = jnp.exp(-jnp.maximum(d * jnp.diagonal(W)[None, None, :] + b, 0.0))
    assert gamma_d.shape == (T, B, I)
    assert jnp.allclose(gamma_d, ref_d, atol=1e-5, rtol=1e-5)

    # bf16 deltas passed straight in (no wrapper-side astype pass); f32 accumulate.
    d_bf16 = d.astype(jnp.bfloat16)
    gamma_bf = jax.block_until_ready(temporal_decay(d_bf16, W, b, diag=False))
    ref_bf = jnp.exp(-jnp.maximum(
        jnp.einsum("tbi,oi->tbo",
                   d_bf16.astype(jnp.float32),
                   W.astype(jnp.bfloat16).astype(jnp.float32)) + b, 0.0))
    assert jnp.allclose(gamma_bf.astype(jnp.float32), ref_bf, atol=3e-2, rtol=3e-2)

    print("KERNEL_OK")
</pallas_src>

<mosaic_0001>
module attributes {stable_mosaic.version = 11 : i64} {
  func.func @_td_dense_kernel(%arg0: i32, %arg1: memref<16x32xf32, #tpu.memory_space<vmem>>, %arg2: memref<32x32xf32, #tpu.memory_space<vmem>>, %arg3: memref<1x32xf32, #tpu.memory_space<vmem>>, %arg4: memref<16x32xf32, #tpu.memory_space<vmem>>) attributes {dimension_semantics = [#tpu.dimension_semantics<parallel>], iteration_bounds = array<i64: 2>, scalar_prefetch = 0 : i64, scratch_operands = 0 : i64, tpu.core_type = #tpu.core_type<tc>, window_params = [{transform_indices = @transform_0, window_bounds = array<i64: 16, 32>}, {pipeline_mode = #tpu.pipeline_mode<synchronous>, transform_indices = @transform_1, window_bounds = array<i64: 32, 32>}, {pipeline_mode = #tpu.pipeline_mode<synchronous>, transform_indices = @transform_2, window_bounds = array<i64: 1, 32>}, {transform_indices = @transform_3, window_bounds = array<i64: 16, 32>}]} {
    %c0 = arith.constant 0 : index
    %c0_0 = arith.constant 0 : index
    %0 = vector.load %arg1[%c0, %c0_0] : memref<16x32xf32, #tpu.memory_space<vmem>>, vector<16x32xf32>
    %c0_1 = arith.constant 0 : index
    %c0_2 = arith.constant 0 : index
    %1 = vector.load %arg2[%c0_1, %c0_2] : memref<32x32xf32, #tpu.memory_space<vmem>>, vector<32x32xf32>
    %cst = arith.constant dense<0.000000e+00> : vector<16x32xf32>
    %2 = tpu.matmul %0, %1, %cst {dimension_numbers = #tpu.dot_dimension_numbers<[1], [1], [0], [0], [0, 0, 1, 0], [], []>} : vector<16x32xf32>, vector<32x32xf32>, vector<16x32xf32> -> vector<16x32xf32>
    %c0_3 = arith.constant 0 : index
    %c0_4 = arith.constant 0 : index
    %3 = vector.load %arg3[%c0_3, %c0_4] : memref<1x32xf32, #tpu.memory_space<vmem>>, vector<1x32xf32>
    %4 = vector.broadcast %3 : vector<1x32xf32> to vector<16x32xf32>
    %5 = arith.addf %2, %4 : vector<16x32xf32>
    %cst_5 = arith.constant 0.000000e+00 : f32
    %6 = vector.broadcast %cst_5 : f32 to vector<16x32xf32>
    %7 = arith.maximumf %5, %6 : vector<16x32xf32>
    %cst_6 = arith.constant 0.000000e+00 : f32
    %8 = vector.broadcast %cst_6 : f32 to vector<16x32xf32>
    %9 = arith.subf %8, %7 : vector<16x32xf32>
    %10 = math.exp %9 : vector<16x32xf32>
    %c0_7 = arith.constant 0 : index
    %c0_8 = arith.constant 0 : index
    %11 = vector.load %arg4[%c0_7, %c0_8] : memref<16x32xf32, #tpu.memory_space<vmem>>, vector<16x32xf32>
    tpu.vector_store %arg4[%c0_7, %c0_8], %10 {strides = array<i32>} : memref<16x32xf32, #tpu.memory_space<vmem>>, vector<16x32xf32>,
    return
  }
  func.func @transform_0(%arg0: i32) -> (i32, i32) {
    %c0_i32 = arith.constant 0 : i32
    %c0_i32_0 = arith.constant 0 : i32
    return %arg0, %c0_i32 : i32, i32
  }
  func.func @transform_1(%arg0: i32) -> (i32, i32) {
    %c0_i32 = arith.constant 0 : i32
    %c0_i32_0 = arith.constant 0 : i32
    %c0_i32_1 = arith.constant 0 : i32
    return %c0_i32, %c0_i32_0 : i32, i32
  }
  func.func @transform_2(%arg0: i32) -> (i32, i32) {
    %c0_i32 = arith.constant 0 : i32
    %c0_i32_0 = arith.constant 0 : i32
    %c0_i32_1 = arith.constant 0 : i32
    return %c0_i32, %c0_i32_0 : i32, i32
  }
  func.func @transform_3(%arg0: i32) -> (i32, i32) {
    %c0_i32 = arith.constant 0 : i32
    %c0_i32_0 = arith.constant 0 : i32
    return %arg0, %c0_i32 : i32, i32
  }
}

</mosaic_0001>

<bundles_post_ra>
// kernel: tpu_custom_call.1
= control target key start
LH: loop header
LB: loop body
LE: loop exit
PB: predicated region body
PF: predicated region fallthrough
CT: control target
= control target key end

     0   :  { %8 = vsyncpa [#allocation3], 0  ;;  %s880_s0 = inlined_call_operand.hbm [shape: f32[32,32], index: 0, kind: input, shape index: {}]   ;;  %s881_s1 = inlined_call_operand.hbm [shape: f32[32,32], index: 1, kind: input, shape index: {}]   ;;  %s882_s2 = inlined_call_operand.vmem [shape: f32[1,32], index: 2, kind: input, shape index: {}]   ;;  %s883_s3 = inlined_call_operand.hbm [shape: f32[32,32], index: 3, kind: output, shape index: {}]  }
   0x1   :  { %10 = vsyncpa [#allocation3 + $0x1], 0 }
   0x2   :  { %11 = vsyncpa [#allocation6], 0 }
   0x3   :  { %12 = vsyncpa [#allocation4], 0 }
   0x4   :  { %14 = vsyncpa [#allocation4 + $0x1], 0  ;;  %s678_s12 = smov 0   ;;  %s680_s13 = smov 0  }
   0x5   :  { %s682_s14 = smov 0   ;;  %s684_s15 = smov 0  }
   0x6 LB: > { %s699_s16 = sadd.s32 4294967295, %s649_s15   ;;  %s420_s17 = sadd.s32 4294967294, %s649_s15   ;;  %s649_s15 = sphi %s684_s15, %s905_s15   ;;  %s645_s14 = sphi %s682_s14, %s904_s14   ;;  %s641_s13 = sphi %s680_s13, %s903_s13   ;;  %s637_s12 = sphi %s678_s12, %s902_s12  }
   0x7   : > { %p40_p0 = scmp.ne.s32.totalorder %s641_s13, %s637_s12  ;;  %p884_p1 = scmp.eq.s32.totalorder %s699_s16, 0 }
   0x8   : > { %p112_p3 = scmp.eq.s32.totalorder %s420_s17, 1  ;;  %p421_p5 = scmp.ge.s32.totalorder %s649_s15, 1 }
   0x9   : > { %p708_p4 = por %p884_p1, %p40_p0  ;;  %p119_p7 = scmp.lt.s32.totalorder %s649_s15, 3 }
   0xa   : > { %p713_p6 = por %p112_p3, %p40_p0  ;;  %s651_s21 = smov [#allocation5]  }
   0xb   : > { %s888_s18 = scalar_select %p708_p4, 1, 0 }
   0xc   : > { %s889_s19 = scalar_select %p713_p6, 1, 0 }
   0xd   : > { %p718_p8 = pnand %p421_p5, %p119_p7  ;;  %s131_s22 = sshll.u32 %s651_s21, 4  ;;  %s132_s22 = int_to_ptr.vmem [resolvable:$true] %s131_s22 }
   0xe   : > { %s732_s24 = sadd.s32 1, %s649_s15   ;;  %s27_s25 = sadd.s32 1, %s645_s14 }
   0xf   : > { %s890_s20 = scalar_select %p718_p8, 1, 0 }
  0x10   : > { %p470_p9 = pneg %p718_p8  ;;  %s24_s26 = ssub.s32 %s649_s15, %s732_s24 }
  0x11   : > { %s538_s27 = scalar_lea.vmem %s132_s22, 512  ;;  %p546_p5 = scmp.lt.s32.totalorder %s132_s22, %s132_s22 }
  0x12   : > { %p727_p11 = pnand %p470_p9, %p884_p1  ;;  %p539_p13 = scmp.ne.s32.totalorder %s132_s22, %s538_s27 }
  0x13   : > { %p547_p7 = scmp.lt.s32.totalorder %s538_s27, %s538_s27 }
  0x14   : > { %p529_p12 = pneg %p727_p11 }
  0x15   : > { %p548_p10 = por %p547_p7, %p546_p5 }
  0x16   : > { %p541_p0 = pnand %p539_p13, %p529_p12 }
  0x18   : > { %p542_p3 = pneg %p541_p0 }
  0x1a   : > { %p549_p2 = pnand %p548_p10, %p542_p3 }
  0x1c   : > { %552 = shalt.err (!%p549_p2)
}
  0x1d   : > { %s652_s28 = smov 128   ;;  %s653_s29 = smov 8  }
  0x1e   : > { %473 = dma.hbm_to_vmem [thread:$0]  (!%p727_p11), %s881_s1, 512, %s132_s22, [#allocation6], %s652_s28, %s652_s28, %s653_s29  }
  0x1f   : > { %p25_p2 = scmp.eq.s32.totalorder %s24_s26, 0  ;;  %p34_p9 = scmp.ne.s32.totalorder %s645_s14, %s641_s13 }
  0x20   : > { %p35_p10 = scmp.eq.s32.totalorder %s649_s15, 0  ;;  %p483_p12 = scmp.lt.s32.totalorder %s649_s15, 2 }
  0x21   : > { %s752_s5 = scalar_select %p25_p2, %s645_s14, %s27_s25  }
  0x22   : > { %p36_p13 = por %p35_p10, %p34_p9  ;;  %p892_p0 = scmp.eq.s32.totalorder %s699_s16, 1 }
  0x23   : > { %s148_s7 = sand.u32 1, %s645_s14   ;;  %s443_s8 = sshll.u32 %s649_s15, 8 }
  0x24   : > { %p756_p3 = por %p892_p0, %p34_p9  ;;  %s424_s9 = sshll.u32 %s148_s7, 4 }
  0x25   : > { %s765_s17 = scalar_lea.hbm %s880_s0, %s443_s8  ;;  %s152_s21 = scalar_lea.vmem [#allocation2], %s424_s9 }
  0x26   : > { %s893_s6 = scalar_select %p756_p3, 1, 0 }
  0x27   : > { %s159_s22 = sshll.u32 %s152_s21, 4  ;;  %p767_p11 = pnand %p483_p12, %p36_p13  ;;  %s771_s22 = int_to_ptr.vmem [resolvable:$true] %s159_s22 }
  0x28   : > { %s773_s25 = scalar_lea.sflag [#allocation3], %s148_s7  ;;  %s553_s26 = scalar_lea.hbm %s765_s17, 256 }
  0x29   : > { %p554_p5 = scmp.ne.s32.totalorder %s765_s17, %s553_s26  ;;  %p555_p7 = pneg %p767_p11 }
  0x2a   : > { %s558_s4 = scalar_lea.hbm %s880_s0, 512  ;;  %p559_p10 = scmp.lt.s32.totalorder %s765_s17, %s880_s0 }
  0x2b   : > { %p556_p2 = pnand %p555_p7, %p554_p5  ;;  %p560_p12 = scmp.lt.s32.totalorder %s558_s4, %s553_s26 }
  0x2d   : > { %p557_p9 = pneg %p556_p2  ;;  %p561_p13 = por %p560_p12, %p559_p10 }
  0x2f   : > { %p562_p0 = pnand %p561_p13, %p557_p9 }
  0x31   : > { %565 = shalt.err (!%p562_p0)
}
  0x32   : > { %s566_s7 = scalar_lea.vmem %s771_s22, 256  ;;  %s654_s10 = smov [#allocation2]  }
  0x33   : > { %p567_p1 = scmp.ne.s32.totalorder %s771_s22, %s566_s7  ;;  %s571_s11 = sshll.u32 %s654_s10, 4  ;;  %s572_s11 = int_to_ptr.vmem [resolvable:$false] %s571_s11 }
  0x34   : > { %s573_s21 = scalar_lea.vmem %s572_s11, 512  ;;  %p574_p2 = scmp.lt.s32.totalorder %s771_s22, %s572_s11 }
  0x35   : > { %p569_p6 = pnand %p567_p1, %p555_p7  ;;  %p575_p3 = scmp.lt.s32.totalorder %s573_s21, %s566_s7 }
  0x37   : > { %p570_p5 = pneg %p569_p6  ;;  %p576_p4 = por %p575_p3, %p574_p2 }
  0x39   : > { %p577_p8 = pnand %p576_p4, %p570_p5 }
  0x3b   : > { %580 = shalt.err (!%p577_p8)
}
  0x3c   : > { %477 = dma.hbm_to_vmem [thread:$0]  (!%p767_p11), %s765_s17, 256, %s771_s22, %s773_s25, %s652_s28, %s652_s28, %s653_s29  }
  0x3d   : > { %p895_p1 = scmp.ne.s32.totalorder %s890_s20, 0 }
  0x3e   : > { %s800_s26 = sand.u32 (!%p895_p1), 1, %s641_s13   ;;  %p896_p4 = scmp.ne.s32.totalorder (!%p895_p1), %s888_s18, 0 }
  0x3f   : > { %171 = sbr.rel (%p895_p1) target bundleno = 320 (0x140), region = 32  ;;  %s428_s27 = sshll.u32 (!%p895_p1), %s800_s26, 4 }
  0x40   : > { %s174_s30 = scalar_lea.sflag (!%p895_p1), [#allocation3], %s800_s26  ;;  %s177_s23 = scalar_lea.vmem (!%p895_p1), [#allocation2], %s428_s27 }
  0x44   : > { %624 = dma.done.wait (%p896_p4), %s174_s30, 256  }
  0x45   : > { %626 = vsyncadd (%p896_p4), %s174_s30, 4294967040  ;;  %p897_p6 = scmp.eq.s32.totalorder %s699_s16, 0 }
  0x47   : > { %628 = dma.done.wait (%p897_p6), [#allocation6], 512   ;;  %p898_p8 = pmov %p897_p6 }
  0x48   : > { %vm219_vm0 = vcmask 261120   ;;  %v211_v0 = vld [vmem:[#allocation5 + $0x18] sm:$0xff]  ;;  %v210_v1 = vld [vmem:[#allocation5 + $0x10] sm:$0xff]  ;;  %v209_v3 = vld [vmem:[#allocation5 + $0x8] sm:$0xff]  ;;  %s444_s28 = sshll.u32 %s699_s16, 8  ;;  %s203_s29 = scalar_lea.vmem [#allocation7], %s428_s27 }
  0x49   : > { %630 = vsyncadd (%p898_p8), [#allocation6], 4294966784  ;;  %451 = vmatprep.subr.msk.mxu0 %vm219_vm0, %v211_v0  ;;  %v206_v2 = vld [vmem:[%s177_s23] sm:$0xff]  ;;  %v207_v5 = vld [vmem:[%s177_s23 + $0x8] sm:$0xff]  ;;  %s337_s17 = sshll.u32 %s203_s29, 4  ;;  %s833_s4 = scalar_lea.hbm %s883_s3, %s444_s28  ;;  %s835_s17 = int_to_ptr.vmem [resolvable:$true] %s337_s17 }
  0x4a   : > { %452 = vmatpush3.xpose.msk.msra.mxu0 %vm219_vm0, %v211_v0  ;;  %459 = vmatprep.mubr.msk.f32.mxu0 %vm219_vm0, %v206_v2  ;;  %v208_v4 = vld [vmem:[#allocation5] sm:$0xff]  ;;  %s324_s16 = scalar_lea.sflag [#allocation4], %s800_s26  ;;  %s581_s8 = scalar_lea.vmem %s835_s17, 256 }
  0x4b   : > { %453 = vmatprep.subr.msk.mxu0 %vm219_vm0, %v210_v1  ;;  %v431_v6 = vld [vmem:[%s882_s2] ss:$0 sm:$0xff]  ;;  %p582_p3 = scmp.ne.s32.totalorder %s835_s17, %s581_s8  ;;  %p899_p11 = scmp.ne.s32.totalorder %s893_s6, 0 }
  0x4c   : > { %s655_s9 = smov [#allocation7]  }
  0x4d   : > { %p583_p7 = pnand %p582_p3, %p899_p11  ;;  %s585_s7 = sshll.u32 %s655_s9, 4  ;;  %s586_s7 = int_to_ptr.vmem [resolvable:$false] %s585_s7 }
  0x4e   : > { %454 = vmatpush3.xpose.msk.msra.mxu0 %vm219_vm0, %v210_v1  ;;  %s587_s10 = scalar_lea.vmem %s586_s7, 512  ;;  %p588_p10 = scmp.lt.s32.totalorder %s835_s17, %s586_s7 }
  0x4f   : > { %455 = vmatprep.subr.msk.mxu0 %vm219_vm0, %v209_v3  ;;  %p584_p9 = pneg %p583_p7  ;;  %p589_p12 = scmp.lt.s32.totalorder %s587_s10, %s581_s8 }
  0x51   : > { %p590_p13 = por %p589_p12, %p588_p10 }
  0x52   : > { %456 = vmatpush3.xpose.msk.msra.mxu0 %vm219_vm0, %v209_v3 }
  0x53   : > { %457 = vmatprep.subr.msk.mxu0 %vm219_vm0, %v208_v4  ;;  %p591_p0 = pnand %p590_p13, %p584_p9 }
  0x56   : > { %458 = vmatpush3.xpose.msk.msra.mxu0 %vm219_vm0, %v208_v4 }
  0x59   : > { %460 = vmatmul.mubr.msk.f32.vlgmr.msra.gmra.mxu0 %vm219_vm0, %v207_v5 }
 0x119   : > { %v461_v7 = vpop.f32.mrf.mxu0 }
 0x11a   : > { %v310_v8 = vadd.f32 %v461_v7, %v431_v6 }
 0x11b   : > { %v304_v9 = vpop.f32.mrf.mxu0 }
 0x11c   : > { %v314_v10 = vmax.f32 %v310_v8, 0.0  ;;  %v305_v11 = vadd.f32 %v431_v6, %v304_v9 }
 0x11e   : > { %v316_v12 = vsub.f32 0.0, %v314_v10  ;;  %v313_v13 = vmax.f32 %v305_v11, 0.0 }
 0x120   : > { %v319_v14 = vmul.f32 1.442695, %v316_v12  ;;  %v315_v15 = vsub.f32 0.0, %v313_v13 }
 0x122   : > { %523 = vpow2.f32 %v319_v14  ;;  %v317_v16 = vmul.f32 1.442695, %v315_v15 }
 0x124   : > { %525 = vpow2.f32 %v317_v16 }
 0x12f   : > { %v524_v17 = vpop.eup %523 }
 0x130   : > { %322 = vst.msk [vmem:[%s203_s29 + $0x8] sm:$0xff] %vm219_vm0, %v524_v17 }
 0x131   : > { %v526_v18 = vpop.eup %525 }
 0x132   : > { %321 = vst.msk [vmem:[%s203_s29] sm:$0xff] %vm219_vm0, %v526_v18 }
 0x133   : > { %594 = shalt.err (!%p591_p0)
}
 0x134   : > { %s595_s11 = scalar_lea.hbm %s833_s4, 256  ;;  %s599_s30 = scalar_lea.hbm %s883_s3, 512 }
 0x135   : > { %p596_p5 = scmp.ne.s32.totalorder %s833_s4, %s595_s11  ;;  %p600_p4 = scmp.lt.s32.totalorder %s833_s4, %s883_s3 }
 0x136   : > { %p601_p6 = scmp.lt.s32.totalorder %s599_s30, %s595_s11 }
 0x137   : > { %p597_p2 = pnand %p596_p5, %p899_p11 }
 0x138   : > { %p602_p8 = por %p601_p6, %p600_p4 }
 0x139   : > { %p598_p1 = pneg %p597_p2 }
 0x13b   : > { %p603_p3 = pnand %p602_p8, %p598_p1 }
 0x13d   : > { %606 = shalt.err (!%p603_p3)
}
 0x13e   : > { %s656_s20 = smov 128   ;;  %s657_s28 = smov 8  }
 0x13f   : > { %468 = dma.vmem_to_hbm [thread:$0]  (%p899_p11), %s835_s17, 256, %s833_s4, %s324_s16, %s656_s20, %s656_s20, %s657_s28  }
 0x140 PF: > { %s352_s29 = sand.u32 1, %s637_s12   ;;  %p900_p7 = scmp.ne.s32.totalorder %s889_s19, 0 }
 0x141   : > { %p901_p9 = scmp.ge.s32.totalorder %s649_s15, 2  ;;  %s353_s22 = scalar_lea.sflag [#allocation4], %s352_s29 }
 0x143   : > { %p479_p10 = pnand %p901_p9, %p900_p7 }
 0x145   : > { %p480_p12 = pneg %p479_p10 }
 0x147   : > { %632 = dma.done.wait (%p480_p12), %s353_s22, 256  }
 0x148   : > { %634 = vsyncadd (%p480_p12), %s353_s22, 4294967040  ;;  %p17_p13 = scmp.ge.s32.totalorder %s732_s24, 4   ;;  %s902_s12 = smov %s641_s13 }
 0x149   : > { %s903_s13 = smov %s645_s14  ;;  %s904_s14 = smov %s752_s5 }
 0x14a   : > { %s905_s15 = smov %s732_s24  ;;  %19 = sbr.rel (!%p17_p13) target bundleno = 6 (0x6), region = 81 }
 0x14f   :  { %358 = vsyncpa [#allocation3], 1 }
 0x150   :  { %360 = vsyncpa [#allocation3 + $0x1], 1 }
 0x151   :  { %361 = vsyncpa [#allocation6], 1 }
 0x152   :  { %362 = vsyncpa [#allocation4], 1 }
 0x153   :  { %364 = vsyncpa [#allocation4 + $0x1], 1 }

</bundles_post_ra>
